<compile_context>
chip_gen: v6e
topology: v6e:2x2x1
jax: 0.10.0
libtpu: 0.0.40
codegen_flags: <defaults>
</compile_context>

<pallas_src>
import functools

import jax
import jax.numpy as jnp
from jax.experimental import pallas as pl
from jax.experimental.pallas import tpu as pltpu


def _round_up(x: int, m: int) -> int:
    return (x + m - 1) // m * m


def _cdiv(a: int, b: int) -> int:
    return -(-a // b)


# --------------------------------------------------------------------------- #
# Kernels
# --------------------------------------------------------------------------- #
def _tile_contribution(x_ref, tgt_ref, w_ref, *, smooth, row_limit):
    """Per-element contribution sm_target * w * x for one (TN, C) tile.

    `smooth == 0.0` and `w_ref is None` are *static* specializations (dead
    branches never traced).  `row_limit` (traced scalar or None) zeroes rows
    >= n in ragged / phantom tiles; jnp.where shields NaN/Inf garbage reads.
    """
    x = x_ref[...].astype(jnp.float32)          # (TN, C) f32
    tgt = tgt_ref[...]                          # (TN, 1) int32
    tn, c = x.shape

    row_ids = None
    if row_limit is not None:
        row_ids = jax.lax.broadcasted_iota(jnp.int32, (tn, 1), 0)

    if smooth == 0.0 and row_limit is not None:
        # Fold the row mask into the targets (cheap (TN,1) op) -> no (TN,C) mask.
        tgt = jnp.where(row_ids < row_limit, tgt, -1)
        row_limit = None

    cls_ids = jax.lax.broadcasted_iota(jnp.int32, (1, c), 1)   # (1, C) column ids
    eq = cls_ids == tgt                                        # (TN, C) bool

    t = x if w_ref is None else x * w_ref[...]                 # weighted log-probs

    if smooth == 0.0:
        contrib = jnp.where(eq, t, 0.0)
    else:
        lo = smooth / c
        scale = jnp.where(eq, (1.0 - smooth) + lo, lo)
        contrib = t * scale

    if row_limit is not None:
        contrib = jnp.where(row_ids < row_limit, contrib, 0.0)
    return contrib


def _nll_rows_kernel(*refs, smooth, has_weight):
    """reduce=False: per-row loss, stored lane-dense as a (1, TN) block."""
    if has_weight:
        x_ref, tgt_ref, w_ref, out_ref = refs
    else:
        x_ref, tgt_ref, out_ref = refs
        w_ref = None
    contrib = _tile_contribution(x_ref, tgt_ref, w_ref, smooth=smooth, row_limit=None)
    tn = contrib.shape[0]
    loss = jnp.sum(contrib, axis=1, keepdims=True)     # (TN, 1)
    out_ref[...] = -loss.reshape(1, tn)                # lane-dense store


def _nll_reduce_kernel(*refs, smooth, has_weight, tile_n, n_rows, n_inner, need_mask):
    """reduce=True: accumulate the numerator over (outer, inner) row tiles."""
    if has_weight:
        x_ref, tgt_ref, w_ref, out_ref, acc_ref = refs
    else:
        x_ref, tgt_ref, out_ref, acc_ref = refs
        w_ref = None

    p = pl.program_id(0)           # "parallel" outer axis (one slice per core)
    k = pl.program_id(1)           # "arbitrary" reduction axis

    @pl.when(k == 0)
    def _():
        acc_ref[...] = jnp.zeros_like(acc_ref)

    row_limit = (n_rows - (p * n_inner + k) * tile_n) if need_mask else None
    contrib = _tile_contribution(x_ref, tgt_ref, w_ref, smooth=smooth,
                                 row_limit=row_limit)
    # Partial (sublane) reduction into a lane-dense (1, C) accumulator; the
    # cross-lane reduce to a scalar runs only once, in the finalize below.
    acc_ref[...] += jnp.sum(contrib, axis=0, keepdims=True)

    @pl.when(k == n_inner - 1)
    def _():
        out_ref[...] = jnp.sum(acc_ref[...], axis=1, keepdims=True)   # (1, 1)


# --------------------------------------------------------------------------- #
# Wrapper
# --------------------------------------------------------------------------- #
def _tile_heuristics(n, c, itemsize):
    """Row-tile size & scoped VMEM limit based on the chip's VMEM capacity."""
    try:
        vmem_bytes = pltpu.get_tpu_info().vmem_capacity_bytes
    except Exception:              # unknown hardware -> conservative (v7x-safe)
        vmem_bytes = None
    big_vmem = vmem_bytes is not None and vmem_bytes >= 100 * 1024 * 1024
    target_bytes = (4 if big_vmem else 2) * 1024 * 1024   # per x block
    row_cap = 4096 if big_vmem else 2048
    tile = (target_bytes // max(1, c * itemsize)) // 16 * 16
    tile = max(16, min(tile, row_cap))
    tile = min(tile, _round_up(n, 8))
    tile = max(8, tile // 8 * 8)
    vmem_limit = (64 if big_vmem else 40) * 1024 * 1024
    return tile, vmem_limit


def nll_loss_pallas(x, target, weight=None, smooth: float = 0.0, reduce: bool = True,
                    *, tile_n: int | None = None, reduce_splits: int | None = None):
    """Pallas port of nll_loss.  x: (N, C) log-probs (f32/bf16), target: (N,) int."""
    x = jnp.asarray(x)
    if not jnp.issubdtype(x.dtype, jnp.floating):
        x = x.astype(jnp.float32)
    n, c = x.shape
    smooth = float(smooth)
    has_weight = weight is not None
    itemsize = x.dtype.itemsize

    tgt_col = jnp.asarray(target, jnp.int32).reshape(n, 1)

    auto_tile, vmem_limit = _tile_heuristics(n, c, itemsize)
    if tile_n is None:
        tile_n = auto_tile
    tile_n = int(max(8, (min(tile_n, _round_up(n, 8)) // 8) * 8))
    n_tiles = _cdiv(n, tile_n)

    operands = [x, tgt_col]
    cost = pl.CostEstimate(
        flops=(6 if has_weight else 5) * n * c,
        transcendentals=0,
        bytes_accessed=n * c * itemsize + n * 4
        + (c * 4 if has_weight else 0) + (4 if reduce else n * 4),
    )

    if not reduce:
        in_specs = [pl.BlockSpec((tile_n, c), lambda i: (i, 0)),
                    pl.BlockSpec((tile_n, 1), lambda i: (i, 0))]
        if has_weight:
            in_specs.append(pl.BlockSpec((1, c), lambda i: (0, 0)))
            operands.append(jnp.asarray(weight, jnp.float32).reshape(1, c))
        out = pl.pallas_call(
            functools.partial(_nll_rows_kernel, smooth=smooth, has_weight=has_weight),
            out_shape=jax.ShapeDtypeStruct((n_tiles, tile_n), jnp.float32),
            grid=(n_tiles,),
            in_specs=in_specs,
            out_specs=pl.BlockSpec((1, tile_n), lambda i: (i, 0)),
            compiler_params=pltpu.CompilerParams(
                dimension_semantics=("parallel",),
                vmem_limit_bytes=vmem_limit),
            cost_estimate=cost,
        )(*operands)
        return out.reshape(-1)[:n]

    # ----- reduce=True ----------------------------------------------------- #
    if reduce_splits is None:
        # 2 partials lets v7x's two TensorCores split the stream; on 1-TC chips
        # the outer "parallel" axis just runs sequentially (same total work).
        reduce_splits = 2 if n_tiles >= 2 else 1
    n_outer = max(1, min(int(reduce_splits), n_tiles))
    n_inner = _cdiv(n_tiles, n_outer)
    need_mask = (n_outer * n_inner * tile_n) != n
    last_tile = n_tiles - 1

    def data_map(p, k):
        t = p * n_inner + k
        return (jnp.minimum(t, last_tile), 0)   # clamp phantom tiles (masked in-kernel)

    in_specs = [pl.BlockSpec((tile_n, c), data_map),
                pl.BlockSpec((tile_n, 1), data_map)]
    if has_weight:
        in_specs.append(pl.BlockSpec((1, c), lambda p, k: (0, 0)))
        operands.append(jnp.asarray(weight, jnp.float32).reshape(1, c))

    partials = pl.pallas_call(
        functools.partial(_nll_reduce_kernel, smooth=smooth, has_weight=has_weight,
                          tile_n=tile_n, n_rows=n, n_inner=n_inner,
                          need_mask=need_mask),
        out_shape=jax.ShapeDtypeStruct((n_outer, 1), jnp.float32),
        grid=(n_outer, n_inner),
        in_specs=in_specs,
        out_specs=pl.BlockSpec((1, 1), lambda p, k: (p, 0)),
        scratch_shapes=[pltpu.VMEM((1, c), jnp.float32)],
        compiler_params=pltpu.CompilerParams(
            dimension_semantics=("parallel", "arbitrary"),
            vmem_limit_bytes=vmem_limit),
        cost_estimate=cost,
    )(*operands)

    num = jnp.sum(partials)
    if has_weight:
        # Denominator hoisted out of the hot loop: sum(w[target]) is O(N).
        w_flat = jnp.asarray(weight, jnp.float32).reshape(c)
        den = jnp.sum(jnp.take(w_flat, jnp.asarray(target, jnp.int32).reshape(n), axis=0))
    else:
        den = jnp.float32(n)
    return -(num / den)


# --------------------------------------------------------------------------- #
# Plain-JAX reference (mirrors the PyTorch code)
# --------------------------------------------------------------------------- #
def _nll_loss_ref(x, target, weight=None, smooth=0.0, reduce=True):
    n_classes = x.shape[1]
    onehot = jax.nn.one_hot(target, n_classes, dtype=jnp.float32)
    sm_target = (1.0 - smooth) * onehot + smooth / n_classes
    if weight is not None:
        w = weight.reshape(1, n_classes)
        if reduce:
            return -(sm_target * w * x).sum() / (onehot * w).sum()
        return -(sm_target * w * x).sum(axis=1)
    if reduce:
        return -(sm_target * x).sum(axis=1).mean()
    return -(sm_target * x).sum(axis=1)


if __name__ == "__main__":
    key = jax.random.PRNGKey(0)
    k1, k2, k3 = jax.random.split(key, 3)

    # Small shapes implied by the module: (batch_tokens, n_classes).
    N, C = 8, 32
    logits = jax.random.normal(k1, (N, C), dtype=jnp.float32)
    x = jax.nn.log_softmax(logits, axis=-1)          # log-probs, as NLL expects
    target = jax.random.randint(k2, (N,), 0, C, dtype=jnp.int32)
    class_weight = jax.random.uniform(k3, (C,), jnp.float32, 0.5, 1.5)

    configs = [
        dict(weight=class_weight, smooth=0.1, reduce=True),
        dict(weight=class_weight, smooth=0.1, reduce=False),
        dict(weight=None, smooth=0.1, reduce=True),
        dict(weight=None, smooth=0.0, reduce=True),
        dict(weight=None, smooth=0.0, reduce=False),
    ]
    for cfg in configs:
        got = nll_loss_pallas(x, target, **cfg)
        jax.block_until_ready(got)
        want = _nll_loss_ref(x, target, **cfg)
        assert jnp.allclose(got, want, rtol=1e-4, atol=1e-5), (cfg, got, want)

    # bf16 input, multi-tile grid, ragged last tile, two-way reduce split.
    N2, C2 = 40, 160
    logits2 = jax.random.normal(k1, (N2, C2), dtype=jnp.float32)
    x2 = jax.nn.log_softmax(logits2, axis=-1).astype(jnp.bfloat16)
    target2 = jax.random.randint(k2, (N2,), 0, C2, dtype=jnp.int32)
    w2 = jax.random.uniform(k3, (C2,), jnp.float32, 0.5, 1.5)
    cases = [
        (dict(weight=w2, smooth=0.05, reduce=True), dict(tile_n=16)),                 # 3 tiles, split=2
        (dict(weight=w2, smooth=0.05, reduce=True), dict(tile_n=16, reduce_splits=1)),
        (dict(weight=None, smooth=0.0, reduce=True), dict(tile_n=16)),                # masked smooth=0 path
        (dict(weight=w2, smooth=0.1, reduce=False), dict(tile_n=16)),
        (dict(weight=None, smooth=0.0, reduce=False), dict(tile_n=16)),
    ]
    for cfg, kwargs in cases:
        got = nll_loss_pallas(x2, target2, **cfg, **kwargs)
        jax.block_until_ready(got)
        want = _nll_loss_ref(x2.astype(jnp.float32), target2, **cfg)
        assert jnp.allclose(got, want, rtol=1e-3, atol=1e-4), (cfg, kwargs, got, want)

    print("KERNEL_OK")
</pallas_src>

<mosaic_0001>
module attributes {stable_mosaic.version = 11 : i64} {
  func.func @_nll_reduce_kernel(%arg0: i32, %arg1: i32, %arg2: memref<8x32xf32, #tpu.memory_space<vmem>>, %arg3: memref<8x1xi32, #tpu.memory_space<vmem>>, %arg4: memref<1x32xf32, #tpu.memory_space<vmem>>, %arg5: memref<1x1xf32, #tpu.memory_space<vmem>>, %arg6: memref<1x32xf32, #tpu.memory_space<vmem>>) attributes {dimension_semantics = [#tpu.dimension_semantics<parallel>, #tpu.dimension_semantics<arbitrary>], iteration_bounds = array<i64: 1, 1>, scalar_prefetch = 0 : i64, scratch_operands = 1 : i64, tpu.core_type = #tpu.core_type<tc>, window_params = [{transform_indices = @transform_0, window_bounds = array<i64: 8, 32>}, {transform_indices = @transform_1, window_bounds = array<i64: 8, 1>}, {pipeline_mode = #tpu.pipeline_mode<synchronous>, transform_indices = @transform_2, window_bounds = array<i64: 1, 32>}, {transform_indices = @transform_3, window_bounds = array<i64: 1, 1>}]} {
    %c0_i32 = arith.constant 0 : i32
    %0 = arith.cmpi eq, %arg1, %c0_i32 : i32
    %1 = arith.extui %0 : i1 to i32
    %c0_i32_0 = arith.constant 0 : i32
    %2 = arith.cmpi ne, %1, %c0_i32_0 : i32
    scf.if %2 {
      %cst_14 = arith.constant 0.000000e+00 : f32
      %24 = vector.broadcast %cst_14 : f32 to vector<1x32xf32>
      %c0_15 = arith.constant 0 : index
      %c0_16 = arith.constant 0 : index
      %25 = vector.load %arg6[%c0_15, %c0_16] : memref<1x32xf32, #tpu.memory_space<vmem>>, vector<1x32xf32>
      tpu.vector_store %arg6[%c0_15, %c0_16], %24 {strides = array<i32>} : memref<1x32xf32, #tpu.memory_space<vmem>>, vector<1x32xf32>,
    } else {
    }
    %c0 = arith.constant 0 : index
    %c0_1 = arith.constant 0 : index
    %3 = vector.load %arg2[%c0, %c0_1] : memref<8x32xf32, #tpu.memory_space<vmem>>, vector<8x32xf32>
    %c0_2 = arith.constant 0 : index
    %c0_3 = arith.constant 0 : index
    %4 = vector.load %arg3[%c0_2, %c0_3] : memref<8x1xi32, #tpu.memory_space<vmem>>, vector<8x1xi32>
    %5 = tpu.iota {dimensions = array<i32: 1>} : vector<1x32xi32>
    %6 = vector.broadcast %5 : vector<1x32xi32> to vector<8x32xi32>
    %7 = vector.broadcast %4 : vector<8x1xi32> to vector<8x32xi32>
    %8 = arith.cmpi eq, %6, %7 : vector<8x32xi32>
    %c0_4 = arith.constant 0 : index
    %c0_5 = arith.constant 0 : index
    %9 = vector.load %arg4[%c0_4, %c0_5] : memref<1x32xf32, #tpu.memory_space<vmem>>, vector<1x32xf32>
    %10 = vector.broadcast %9 : vector<1x32xf32> to vector<8x32xf32>
    %11 = arith.mulf %3, %10 : vector<8x32xf32>
    %cst = arith.constant 0.903124988 : f32
    %cst_6 = arith.constant 3.125000e-03 : f32
    %12 = vector.broadcast %cst : f32 to vector<8x32xf32>
    %13 = vector.broadcast %cst_6 : f32 to vector<8x32xf32>
    %14 = arith.select %8, %12, %13 : vector<8x32xi1>, vector<8x32xf32>
    %15 = arith.mulf %11, %14 : vector<8x32xf32>
    %c0_7 = arith.constant 0 : index
    %c0_8 = arith.constant 0 : index
    %16 = vector.load %arg6[%c0_7, %c0_8] : memref<1x32xf32, #tpu.memory_space<vmem>>, vector<1x32xf32>
    %cst_9 = arith.constant dense<0.000000e+00> : vector<32xf32>
    %17 = vector.multi_reduction <add>, %15, %cst_9 [0] : vector<8x32xf32> to vector<32xf32>
    %18 = vector.shape_cast %17 : vector<32xf32> to vector<1x32xf32>
    %19 = arith.addf %16, %18 : vector<1x32xf32>
    %c0_10 = arith.constant 0 : index
    %c0_11 = arith.constant 0 : index
    %20 = vector.load %arg6[%c0_10, %c0_11] : memref<1x32xf32, #tpu.memory_space<vmem>>, vector<1x32xf32>
    tpu.vector_store %arg6[%c0_10, %c0_11], %19 {strides = array<i32>} : memref<1x32xf32, #tpu.memory_space<vmem>>, vector<1x32xf32>,
    %c0_i32_12 = arith.constant 0 : i32
    %21 = arith.cmpi eq, %arg1, %c0_i32_12 : i32
    %22 = arith.extui %21 : i1 to i32
    %c0_i32_13 = arith.constant 0 : i32
    %23 = arith.cmpi ne, %22, %c0_i32_13 : i32
    scf.if %23 {
      %c0_14 = arith.constant 0 : index
      %c0_15 = arith.constant 0 : index
      %24 = vector.load %arg6[%c0_14, %c0_15] : memref<1x32xf32, #tpu.memory_space<vmem>>, vector<1x32xf32>
      %cst_16 = arith.constant dense<0.000000e+00> : vector<1xf32>
      %25 = vector.multi_reduction <add>, %24, %cst_16 [1] : vector<1x32xf32> to vector<1xf32>
      %26 = vector.shape_cast %25 : vector<1xf32> to vector<1x1xf32>
      %c0_17 = arith.constant 0 : index
      %c0_18 = arith.constant 0 : index
      %27 = vector.load %arg5[%c0_17, %c0_18] : memref<1x1xf32, #tpu.memory_space<vmem>>, vector<1x1xf32>
      tpu.vector_store %arg5[%c0_17, %c0_18], %26 {strides = array<i32>} : memref<1x1xf32, #tpu.memory_space<vmem>>, vector<1x1xf32>,
    } else {
    }
    return
  }
  func.func @transform_0(%arg0: i32, %arg1: i32) -> (i32, i32) {
    %c1_i32 = arith.constant 1 : i32
    %0 = arith.muli %arg0, %c1_i32 : i32
    %1 = arith.addi %0, %arg1 : i32
    %c0_i32 = arith.constant 0 : i32
    %2 = arith.minsi %1, %c0_i32 : i32
    %c0_i32_0 = arith.constant 0 : i32
    %c0_i32_1 = arith.constant 0 : i32
    return %2, %c0_i32_0 : i32, i32
  }
  func.func @transform_1(%arg0: i32, %arg1: i32) -> (i32, i32) {
    %c1_i32 = arith.constant 1 : i32
    %0 = arith.muli %arg0, %c1_i32 : i32
    %1 = arith.addi %0, %arg1 : i32
    %c0_i32 = arith.constant 0 : i32
    %2 = arith.minsi %1, %c0_i32 : i32
    %c0_i32_0 = arith.constant 0 : i32
    %c0_i32_1 = arith.constant 0 : i32
    return %2, %c0_i32_0 : i32, i32
  }
  func.func @transform_2(%arg0: i32, %arg1: i32) -> (i32, i32) {
    %c0_i32 = arith.constant 0 : i32
    %c0_i32_0 = arith.constant 0 : i32
    %c0_i32_1 = arith.constant 0 : i32
    return %c0_i32, %c0_i32_0 : i32, i32
  }
  func.func @transform_3(%arg0: i32, %arg1: i32) -> (i32, i32) {
    %c0_i32 = arith.constant 0 : i32
    %c0_i32_0 = arith.constant 0 : i32
    return %arg0, %c0_i32 : i32, i32
  }
}

</mosaic_0001>

<bundles_post_ra>
// kernel: tpu_custom_call.1
= control target key start
LH: loop header
LB: loop body
LE: loop exit
PB: predicated region body
PF: predicated region fallthrough
CT: control target
= control target key end

     0   :  { %v168_v1 = vmov 0   ;;  %s207_s0 = inlined_call_operand.vmem [shape: f32[8,32], index: 0, kind: input, shape index: {}]   ;;  %s208_s1 = inlined_call_operand.vmem [shape: s32[8,1], index: 1, kind: input, shape index: {}]   ;;  %s209_s2 = inlined_call_operand.vmem [shape: f32[1,32], index: 2, kind: input, shape index: {}]   ;;  %s210_s3 = inlined_call_operand.hbm [shape: f32[1,1], index: 3, kind: output, shape index: {}]  }
   0x1   :  { %v76_v0 = vld [vmem:[%s208_s1] sm:$0xff]  ;;  %145 = vset.pattern.permute.xlu0 %v168_v1 }
   0x2   :  { %8 = vsyncpa [#allocation4], 0  ;;  %80 = vperm.xlu0 %145, %v76_v0   ;;  %vm73_vm0 = vcmask 253952   ;;  %v169_v2 = vmov 0.0   ;;  %v77_v3 = vlaneseq  ;;  %v140_v4 = vld [vmem:[%s209_s2] ss:$0 sm:$0xff] }
   0x3   :  { %74 = vst.msk [vmem:[#allocation2] sm:$0x1] %vm73_vm0, %v169_v2  ;;  %v75_v5 = vld [vmem:[%s207_s0] sm:$0xff]  ;;  %vm94_vm2 = vcmask 261120   ;;  %v170_v9 = vmov 0.003125  }
   0x4   :  { %v78_v6 = vand.u32 127, %v77_v3  ;;  %v90_v7 = vmul.f32 %v140_v4, %v75_v5  ;;  %s171_s0 = smov [#allocation3]   ;;  %vm112_vm3 = vcmask 0  }
   0x5   :  { %s120_s1 = sshll.u32 %s171_s0, 4  ;;  %s121_s1 = int_to_ptr.vmem [resolvable:$true] %s120_s1 }
   0x6   :  { %s146_s2 = scalar_lea.vmem %s121_s1, 16  ;;  %s150_s18 = scalar_lea.vmem %s121_s1, 32 }
   0x7   :  { %p147_p0 = scmp.ne.s32.totalorder %s121_s1, %s146_s2  ;;  %p151_p1 = scmp.lt.s32.totalorder %s121_s1, %s121_s1 }
   0x8   :  { %p152_p2 = scmp.lt.s32.totalorder %s150_s18, %s146_s2 }
   0xa   :  { %v93_v18 = vld [vmem:[#allocation2] sm:$0x1]  ;;  %p153_p3 = por %p152_p2, %p151_p1 }
   0xc   :  { %p154_p4 = pnand %p153_p3, %p147_p0 }
  0x7d   :  { %v81_v8 = vpop.permute.xlu0 %80 }
  0x7e   :  { %vm82_vm1 = vcmp.eq.s32.totalorder %v78_v6, %v81_v8 }
  0x7f   :  { %v91_v10 = vsel %vm82_vm1, 0.903125, %v170_v9 }
  0x80   :  { %v92_v11 = vmul.f32 %v91_v10, %v90_v7 }
  0x82   :  { %v95_v12 = vsel %vm94_vm2, %v92_v11, 0.0 }
  0x83   :  { %v96_v13 = vrot.slane %v95_v12, 4 }
  0x85   :  { %v97_v14 = vadd.f32 %v96_v13, %v95_v12 }
  0x87   :  { %v98_v15 = vrot.slane %v97_v14, 2 }
  0x89   :  { %v99_v16 = vadd.f32 %v98_v15, %v97_v14 }
  0x8b   :  { %v100_v17 = vrot.slane %v99_v16, 1 }
  0x8d   :  { %v101_v19 = vadd.f32 %v100_v17, %v99_v16 }
  0x8f   :  { %v102_v20 = vadd.f32 %v101_v19, %v93_v18 }
  0x91   :  { %104 = vst.msk [vmem:[#allocation2] sm:$0x1] %vm73_vm0, %v102_v20 }
  0x98   :  { %v108_v21 = vld [vmem:[#allocation2] sm:$0x1] }
  0x99   :  { %v109_v22 = vsel %vm73_vm0, %v108_v21, 0.0 }
  0x9a   :  { %110 = vadd.xlane.f32.xlu0 %v109_v22 }
 0x123   :  { %v111_v23 = vpop.xlane.xlu0 %110 }
 0x124   :  { %113 = vst.msk [vmem:[#allocation3] sm:$0x1] %vm112_vm3, %v111_v23 }
 0x125   :  { %157 = shalt.err (!%p154_p4)
}
 0x126   :  { %123 = dma.vmem_to_hbm [thread:$0]  %s121_s1, 16, %s210_s3, [#allocation4]  }
 0x127   :  { %166 = dma.done.wait [#allocation4], 16  }
 0x128   :  { %167 = vsyncadd [#allocation4], 4294967280 }
 0x129   :  { %127 = vsyncpa [#allocation4], 1 }

</bundles_post_ra>
